<compile_context>
chip_gen: v6e
topology: v6e:2x2x1
jax: 0.10.0
libtpu: 0.0.40
codegen_flags: <defaults>
</compile_context>

<pallas_src>
import jax
import jax.numpy as jnp
from jax.experimental import pallas as pl
from jax.experimental.pallas import tpu as pltpu

LANE = 128          # lane width (last dim of every vreg)
SUBLANE_I8 = 32     # int8 tile is (32, 128)


def fused_linear_mask_kernel(x_ref, w_ref, b_ref, mask_ref, out_ref, hi_ref, cnt_ref):
    """out = x @ W + b; thr = sum(out)/B; hi = (mask > thr) int8; cnt = sum(hi)."""
    x = x_ref[...]                                          # (B, F_in)
    w = w_ref[...]                                          # (F_in, F_out)
    out = jnp.dot(x, w, preferred_element_type=jnp.float32) + b_ref[...]
    out_ref[...] = out.astype(out_ref.dtype)

    # sum over features per-row, then mean over rows == total sum / batch
    thr = jnp.sum(out) / out.shape[0]

    # Mask compare in the same kernel: threshold stays in a register (no HBM
    # round-trip, no second launch).  mask_ref is a lane-dense (rows, 128)
    # view, so the int8 store is a full unmasked vst.  Padding rows (if any)
    # hold -inf and therefore never compare true.
    cmp = mask_ref[...] > thr
    hi_ref[...] = cmp.astype(jnp.int8)

    # Hit count (int32, overflow-safe) so downstream can skip work.
    row_cnt = jnp.sum(cmp.astype(jnp.int32), axis=1, keepdims=True)   # (rows, 1)
    cnt_ref[...] = jnp.sum(row_cnt, axis=0, keepdims=True)            # (1, 1)


@jax.jit
def my_module_forward(x, w, b, mask):
    B, _ = x.shape
    F_out = w.shape[1]
    M0, M1, M2 = mask.shape
    total = M0 * M1 * M2

    # Lane-dense 2-D view of the mask: last dim = 128 lanes, rows padded to a
    # multiple of 32 (int8 tile sublanes).  Padding uses -inf so padded
    # entries never exceed the (finite) threshold.
    rows = pl.cdiv(total, LANE)
    rows_padded = pl.cdiv(rows, SUBLANE_I8) * SUBLANE_I8
    padded_total = rows_padded * LANE

    mask_flat = mask.reshape(total)
    if padded_total != total:
        mask_flat = jnp.pad(mask_flat, (0, padded_total - total),
                            constant_values=-jnp.inf)
    mask2d = mask_flat.reshape(rows_padded, LANE)

    out, hi2d, cnt = pl.pallas_call(
        fused_linear_mask_kernel,
        out_shape=(
            jax.ShapeDtypeStruct((B, F_out), jnp.float32),
            jax.ShapeDtypeStruct((rows_padded, LANE), jnp.int8),
            jax.ShapeDtypeStruct((1, 1), jnp.int32),
        ),
        in_specs=[
            pl.BlockSpec(memory_space=pltpu.MemorySpace.VMEM),   # x
            pl.BlockSpec(memory_space=pltpu.MemorySpace.VMEM),   # W (F_in, F_out)
            pl.BlockSpec(memory_space=pltpu.MemorySpace.VMEM),   # b (1, F_out)
            pl.BlockSpec(memory_space=pltpu.MemorySpace.VMEM),   # mask (rows, 128)
        ],
        out_specs=(
            pl.BlockSpec(memory_space=pltpu.MemorySpace.VMEM),   # out
            pl.BlockSpec(memory_space=pltpu.MemorySpace.VMEM),   # hi (int8)
            pl.BlockSpec(memory_space=pltpu.MemorySpace.VMEM),   # count
        ),
    )(x, w, b, mask2d)

    # TODO(synk): torch's (mask > threshold).nonzero(as_tuple=True) returns
    # data-dependent-length index tensors; JAX needs a static size, so the
    # index tuple is padded with -1 up to mask.size entries.  Downstream
    # consumers must ignore the -1 padding (the returned hit count bounds the
    # valid prefix).
    hi_flat = hi2d.reshape(padded_total)[:total]
    (flat_idx,) = jnp.nonzero(hi_flat, size=total, fill_value=-1)
    valid = flat_idx >= 0
    i0 = jnp.where(valid, flat_idx // (M1 * M2), -1)
    i1 = jnp.where(valid, (flat_idx // M2) % M1, -1)
    i2 = jnp.where(valid, flat_idx % M2, -1)
    hi_idx = (i0, i1, i2)

    return out, hi_idx, cnt[0, 0]


if __name__ == "__main__":
    # Small shapes consistent with the module: input (B, in_features), 3-D mask.
    B, F_IN, F_OUT = 8, 32, 16
    M0, M1, M2 = 16, 16, 16

    key = jax.random.PRNGKey(0)
    k_x, k_m, k_w, k_b = jax.random.split(key, 4)

    x = jax.random.uniform(k_x, (B, F_IN), dtype=jnp.float32)          # torch.rand
    mask = jax.random.uniform(k_m, (M0, M1, M2), dtype=jnp.float32)    # torch.rand

    # Deterministic nn.Linear-style init: U(-1/sqrt(F_IN), 1/sqrt(F_IN))
    bound = 1.0 / (F_IN ** 0.5)
    w = jax.random.uniform(k_w, (F_IN, F_OUT), dtype=jnp.float32,
                           minval=-bound, maxval=bound)
    b = jax.random.uniform(k_b, (1, F_OUT), dtype=jnp.float32,
                           minval=-bound, maxval=bound)

    out, hi_idx, n_hits = my_module_forward(x, w, b, mask)
    jax.block_until_ready(out)
    jax.block_until_ready(hi_idx)
    jax.block_until_ready(n_hits)

    # Lightweight sanity check against a plain-JAX reference.
    ref_out = x @ w + b
    ref_thr = ref_out.sum(axis=1).mean()
    assert jnp.allclose(out, ref_out, atol=1e-5, rtol=1e-5)

    ref_hits = int((mask > ref_thr).sum())
    got_hits_from_idx = int((hi_idx[0] >= 0).sum())
    got_hits_from_cnt = int(n_hits)
    assert ref_hits == got_hits_from_idx == got_hits_from_cnt, (
        ref_hits, got_hits_from_idx, got_hits_from_cnt)

    # Check that the decoded (i0, i1, i2) coordinates really index hit cells.
    valid = hi_idx[0] >= 0
    vals = mask[hi_idx[0], hi_idx[1], hi_idx[2]]
    assert bool(jnp.all(jnp.where(valid, vals > ref_thr, True)))

    print("KERNEL_OK")
</pallas_src>

<mosaic_0001>
module attributes {stable_mosaic.version = 11 : i64} {
  func.func private @main(%arg0: i32) attributes {dimension_semantics = [#tpu.dimension_semantics<core_parallel>], iteration_bounds = array<i64: 2>, tpu.core_type = #tpu.core_type<sc_scalar_subcore>, window_params = []} {
    return
  }
}

module attributes {stable_mosaic.version = 11 : i64} {
  func.func private @main(%arg0: i32) attributes {dimension_semantics = [#tpu.dimension_semantics<core_parallel>], iteration_bounds = array<i64: 2>, tpu.core_type = #tpu.core_type<sc_scalar_subcore>, window_params = []} {
    return
  }
}

module attributes {stable_mosaic.version = 11 : i64} {
  func.func @fused_linear_mask_kernel(%arg0: memref<8x32xf32, #tpu.memory_space<vmem>>, %arg1: memref<32x16xf32, #tpu.memory_space<vmem>>, %arg2: memref<1x16xf32, #tpu.memory_space<vmem>>, %arg3: memref<32x128xf32, #tpu.memory_space<vmem>>, %arg4: memref<8x16xf32, #tpu.memory_space<vmem>>, %arg5: memref<32x128xi8, #tpu.memory_space<vmem>>, %arg6: memref<1x1xi32, #tpu.memory_space<vmem>>) attributes {dimension_semantics = [], scalar_prefetch = 0 : i64, scratch_operands = 0 : i64, tpu.core_type = #tpu.core_type<tc>} {
    %c0 = arith.constant 0 : index
    %c0_0 = arith.constant 0 : index
    %0 = vector.load %arg0[%c0, %c0_0] : memref<8x32xf32, #tpu.memory_space<vmem>>, vector<8x32xf32>
    %c0_1 = arith.constant 0 : index
    %c0_2 = arith.constant 0 : index
    %1 = vector.load %arg1[%c0_1, %c0_2] : memref<32x16xf32, #tpu.memory_space<vmem>>, vector<32x16xf32>
    %cst = arith.constant dense<0.000000e+00> : vector<8x16xf32>
    %2 = tpu.matmul %0, %1, %cst {dimension_numbers = #tpu.dot_dimension_numbers<[1], [0], [0], [1], [0, 0, 1, 1], [], []>} : vector<8x32xf32>, vector<32x16xf32>, vector<8x16xf32> -> vector<8x16xf32>
    %c0_3 = arith.constant 0 : index
    %c0_4 = arith.constant 0 : index
    %3 = vector.load %arg2[%c0_3, %c0_4] : memref<1x16xf32, #tpu.memory_space<vmem>>, vector<1x16xf32>
    %4 = vector.broadcast %3 : vector<1x16xf32> to vector<8x16xf32>
    %5 = arith.addf %2, %4 : vector<8x16xf32>
    %c0_5 = arith.constant 0 : index
    %c0_6 = arith.constant 0 : index
    %6 = vector.load %arg4[%c0_5, %c0_6] : memref<8x16xf32, #tpu.memory_space<vmem>>, vector<8x16xf32>
    tpu.vector_store %arg4[%c0_5, %c0_6], %5 {strides = array<i32>} : memref<8x16xf32, #tpu.memory_space<vmem>>, vector<8x16xf32>,
    %7 = vector.shape_cast %5 : vector<8x16xf32> to vector<1x8x16xf32>
    %cst_7 = arith.constant dense<0.000000e+00> : vector<1xf32>
    %8 = vector.multi_reduction <add>, %7, %cst_7 [1, 2] : vector<1x8x16xf32> to vector<1xf32>
    %9 = vector.shape_cast %8 : vector<1xf32> to vector<1x1x1xf32>
    %10 = vector.extract %9[0, 0, 0] : f32 from vector<1x1x1xf32>
    %cst_8 = arith.constant 8.000000e+00 : f32
    %11 = arith.divf %10, %cst_8 : f32
    %c0_9 = arith.constant 0 : index
    %c0_10 = arith.constant 0 : index
    %12 = vector.load %arg3[%c0_9, %c0_10] : memref<32x128xf32, #tpu.memory_space<vmem>>, vector<32x128xf32>
    %13 = vector.broadcast %11 : f32 to vector<32x128xf32>
    %14 = arith.cmpf ogt, %12, %13 : vector<32x128xf32>
    %15 = arith.extui %14 : vector<32x128xi1> to vector<32x128xi8>
    %c0_11 = arith.constant 0 : index
    %c0_12 = arith.constant 0 : index
    %16 = vector.load %arg5[%c0_11, %c0_12] : memref<32x128xi8, #tpu.memory_space<vmem>>, vector<32x128xi8>
    tpu.vector_store %arg5[%c0_11, %c0_12], %15 {strides = array<i32>} : memref<32x128xi8, #tpu.memory_space<vmem>>, vector<32x128xi8>,
    %17 = arith.extui %14 : vector<32x128xi1> to vector<32x128xi32>
    %cst_13 = arith.constant dense<0> : vector<32xi32>
    %18 = vector.multi_reduction <add>, %17, %cst_13 [1] : vector<32x128xi32> to vector<32xi32>
    %19 = vector.shape_cast %18 : vector<32xi32> to vector<32x1xi32>
    %cst_14 = arith.constant dense<0> : vector<1xi32>
    %20 = vector.multi_reduction <add>, %19, %cst_14 [0] : vector<32x1xi32> to vector<1xi32>
    %21 = vector.shape_cast %20 : vector<1xi32> to vector<1x1xi32>
    %c0_15 = arith.constant 0 : index
    %c0_16 = arith.constant 0 : index
    %22 = vector.load %arg6[%c0_15, %c0_16] : memref<1x1xi32, #tpu.memory_space<vmem>>, vector<1x1xi32>
    tpu.vector_store %arg6[%c0_15, %c0_16], %21 {strides = array<i32>} : memref<1x1xi32, #tpu.memory_space<vmem>>, vector<1x1xi32>,
    return
  }
}

</mosaic_0001>

<bundles_post_ra>
// kernel: my_module_forward.1
= control target key start
LH: loop header
LB: loop body
LE: loop exit
PB: predicated region body
PF: predicated region fallthrough
CT: control target
= control target key end

     0   :  { %12 = vsyncpa [#allocation3], 0  ;;  %v318_v1 = vmov 0.0   ;;  %vm319_vm0 = vmmov 0   ;;  %s406_s0 = inlined_call_operand.vmem [shape: f32[8,32], index: 0, kind: input, shape index: {}]   ;;  %s407_s1 = inlined_call_operand.vmem [shape: f32[32,16], index: 1, kind: input, shape index: {}]   ;;  %s408_s2 = inlined_call_operand.vmem [shape: f32[1,16], index: 2, kind: input, shape index: {}]   ;;  %s409_s3 = inlined_call_operand.vmem [shape: f32[32,128], index: 3, kind: input, shape index: {}]   ;;  %s410_s4 = inlined_call_operand.hbm [shape: f32[8,16], index: 4, kind: output, shape index: {0}]   ;;  %s411_s5 = inlined_call_operand.vmem [shape: s8[32,128], index: 5, kind: output, shape index: {1}]   ;;  %s412_s6 = inlined_call_operand.hbm [shape: s32[1,1], index: 6, kind: output, shape index: {2}]  }
   0x1   :  { %v28_v0 = vld [vmem:[%s407_s1 + $0x18] sm:$0xff]  ;;  %256 = vmatprep.subr.mxu0 %v318_v1  ;;  %v27_v2 = vld [vmem:[%s407_s1 + $0x10] sm:$0xff]  ;;  %264 = vmatprep.mubr.msk.f32.mxu0 %vm319_vm0, %v318_v1 }
   0x2   :  { %257 = vmatpush3.msra.mxu0 %v28_v0 }
   0x3   :  { %13 = vsyncpa [#allocation5], 0  ;;  %258 = vmatprep.subr.mxu0 %v318_v1  ;;  %v26_v3 = vld [vmem:[%s407_s1 + $0x8] sm:$0xff]  ;;  %v25_v4 = vld [vmem:[%s407_s1] sm:$0xff]  ;;  %vm36_vm1 = vcmask 261120   ;;  %vm110_vm2 = vcmask 130048  }
   0x4   :  { %259 = vmatpush3.msra.mxu0 %v27_v2  ;;  %v24_v5 = vld [vmem:[%s406_s0] sm:$0xff]  ;;  %v126_v19 = vld [vmem:[%s409_s3 + $0x8] sm:$0xff]  ;;  %v127_v20 = vld [vmem:[%s409_s3 + $0x10] sm:$0xff]  ;;  %v320_v23 = vmov 0   ;;  %s321_s23 = smov [#allocation2]  }
   0x5   :  { %260 = vmatprep.subr.mxu0 %v318_v1  ;;  %v249_v6 = vld [vmem:[%s408_s2] ss:$0 sm:$0xff]  ;;  %v128_v21 = vld [vmem:[%s409_s3 + $0x18] sm:$0xff]  ;;  %s223_s24 = sshll.u32 %s321_s23, 4  ;;  %s224_s24 = int_to_ptr.vmem [resolvable:$true] %s223_s24 }
   0x6   :  { %261 = vmatpush3.msra.mxu0 %v26_v3  ;;  %v125_v18 = vld [vmem:[%s409_s3] sm:$0xff]  ;;  %s274_s25 = scalar_lea.vmem %s224_s24, 128  ;;  %p279_p1 = scmp.lt.s32.totalorder %s224_s24, %s224_s24 }
   0x7   :  { %262 = vmatprep.subr.mxu0 %v318_v1  ;;  %p275_p0 = scmp.ne.s32.totalorder %s224_s24, %s274_s25  ;;  %p280_p2 = scmp.lt.s32.totalorder %s274_s25, %s274_s25 }
   0x8   :  { %263 = vmatpush3.msra.mxu0 %v25_v4 }
   0x9   :  { %265 = vmatmul.mubr.msk.f32.vlgmr.msra.gmra.mxu0 %vm36_vm1, %v24_v5  ;;  %p281_p3 = por %p280_p2, %p279_p1 }
   0xb   :  { %p282_p4 = pnand %p281_p3, %p275_p0 }
  0xc9   :  { %v106_v7 = vpop.f32.mrf.mxu0 }
  0xca   :  { %v107_v8 = vadd.f32 %v249_v6, %v106_v7 }
  0xcb   :  { %v266_v9 = vpop.f32.mrf.mxu0 }
  0xcc   :  { %v112_v10 = vsel %vm110_vm2, %v107_v8, 0.0  ;;  %111 = vst.msk [vmem:[#allocation2] sm:$0xff] %vm110_vm2, %v107_v8 }
  0xcd   :  { %113 = vadd.xlane.f32.xlu0 %v112_v10 }
 0x156   :  { %v114_v11 = vpop.xlane.xlu0 %113 }
 0x157   :  { %v115_v12 = vrot.slane %v114_v11, 4 }
 0x159   :  { %v116_v13 = vadd.f32 %v115_v12, %v114_v11 }
 0x15b   :  { %v117_v14 = vrot.slane %v116_v13, 2 }
 0x15d   :  { %v118_v15 = vadd.f32 %v117_v14, %v116_v13 }
 0x15f   :  { %v119_v16 = vrot.slane %v118_v15, 1 }
 0x161   :  { %v120_v17 = vadd.f32 %v119_v16, %v118_v15 }
 0x163   :  { %267 = vpush %v120_v17 }
 0x194   :  { %s268_s0 = spop %267 }
 0x195   :  { %s124_s2 = smul.f32 0.125, %s268_s0 }
 0x197   :  { %v129_v22 = vstv %s124_s2 }
 0x198   :  { %vm130_vm3 = vcmp.gt.f32.partialorder %v125_v18, %v129_v22  ;;  %vm131_vm4 = vcmp.gt.f32.partialorder %v126_v19, %v129_v22  ;;  %vm132_vm5 = vcmp.gt.f32.partialorder %v127_v20, %v129_v22  ;;  %vm133_vm6 = vcmp.gt.f32.partialorder %v128_v21, %v129_v22 }
 0x199   :  { %v155_v24 = vsel %vm131_vm4, 1, %v320_v23  ;;  %vm134_vm7 = vmpackc.low %vm131_vm4, %vm130_vm3  ;;  %v154_v25 = vsel %vm130_vm3, 1, %v320_v23  ;;  %v156_v26 = vsel %vm132_vm5, 1, %v320_v23  ;;  %v157_v27 = vsel %vm133_vm6, 1, %v320_v23 }
 0x19a   :  { %v171_v28 = vshrl.u32 %v155_v24, 16  ;;  %v159_v29 = vshrl.u32 %v154_v25, 16  ;;  %vm135_vm8 = vmpackc.low %vm133_vm6, %vm132_vm5  ;;  %v183_v30 = vshrl.u32 %v156_v26, 16  ;;  %v195_v31 = vshrl.u32 %v157_v27, 16 }
 0x19b   :  { %vm136_vm9 = vmpackc.even %vm135_vm8, %vm134_vm7  ;;  %v170_v41 = vand.u32 65535, %v155_v24  ;;  %v158_v42 = vand.u32 65535, %v154_v25  ;;  %v194_v53 = vand.u32 65535, %v157_v27  ;;  %v182_v54 = vand.u32 65535, %v156_v26 }
 0x19c   :  { %v173_v32 = vcvt.s32.f32 %v171_v28  ;;  %v161_v33 = vcvt.s32.f32 %v159_v29  ;;  %v137_v34 = vsel %vm136_vm9, 16843009, %v320_v23  ;;  %v185_v39 = vcvt.s32.f32 %v183_v30 }
 0x19d   :  { %v138_v35 = vunpack.c.0.s8 %v137_v34  ;;  %v139_v36 = vunpack.c.1.s8 %v137_v34  ;;  %v140_v37 = vunpack.c.2.s8 %v137_v34  ;;  %v141_v38 = vunpack.c.3.s8 %v137_v34 }
 0x19e   :  { %176 = vadd.xlane.f32.xlu1 %v173_v32  ;;  %164 = vadd.xlane.f32.xlu0 %v161_v33  ;;  %v197_v40 = vcvt.s32.f32 %v195_v31  ;;  %v172_v51 = vcvt.s32.f32 %v170_v41  ;;  %v160_v52 = vcvt.s32.f32 %v158_v42  ;;  %v196_v55 = vcvt.s32.f32 %v194_v53 }
 0x19f   :  { %v142_v43 = vpack.c.b16 %v138_v35, %v138_v35  ;;  %v144_v44 = vpack.c.b16 %v139_v36, %v139_v36  ;;  %v146_v45 = vpack.c.b16 %v140_v37, %v140_v37  ;;  %v148_v46 = vpack.c.b16 %v141_v38, %v141_v38 }
 0x1a0   :  { %v184_v56 = vcvt.s32.f32 %v182_v54 }
 0x1a1   :  { %v143_v47 = vpack.c.b8 %v142_v43, %v142_v43  ;;  %v145_v48 = vpack.c.b8 %v144_v44, %v144_v44  ;;  %v147_v49 = vpack.c.b8 %v146_v45, %v146_v45  ;;  %v149_v50 = vpack.c.b8 %v148_v46, %v148_v46 }
 0x1a2   :  { %188 = vadd.xlane.f32.xlu1 %v185_v39  ;;  %200 = vadd.xlane.f32.xlu0 %v197_v40 }
 0x1a3   :  { %150 = vst [vmem:[%s411_s5] sm:$0x3] %v143_v47  ;;  %151 = vst [vmem:[%s411_s5 + $0x2] sm:$0x3] %v145_v48 }
 0x1a4   :  { %152 = vst [vmem:[%s411_s5 + $0x4] sm:$0x3] %v147_v49  ;;  %153 = vst [vmem:[%s411_s5 + $0x6] sm:$0x3] %v149_v50 }
 0x1a6   :  { %174 = vadd.xlane.f32.xlu0 %v172_v51  ;;  %162 = vadd.xlane.f32.xlu1 %v160_v52 }
 0x1aa   :  { %198 = vadd.xlane.f32.xlu0 %v196_v55  ;;  %186 = vadd.xlane.f32.xlu1 %v184_v56 }
 0x1ab   :  { %285 = shalt.err (!%p282_p4)
}
 0x1ac   :  { %226 = dma.vmem_to_hbm [thread:$0]  %s224_s24, 128, %s410_s4, [#allocation3]   ;;  %vm215_vm10 = vcmask 0  }
 0x1ad   :  { %s322_s4 = smov [#allocation4]  }
 0x1ae   :  { %s235_s5 = sshll.u32 %s322_s4, 4  ;;  %s236_s5 = int_to_ptr.vmem [resolvable:$true] %s235_s5 }
 0x1af   :  { %s294_s28 = scalar_lea.vmem %s236_s5, 16  ;;  %s298_s29 = scalar_lea.vmem %s236_s5, 32 }
 0x1b0   :  { %p295_p5 = scmp.ne.s32.totalorder %s236_s5, %s294_s28  ;;  %p299_p6 = scmp.lt.s32.totalorder %s236_s5, %s236_s5 }
 0x1b1   :  { %p300_p7 = scmp.lt.s32.totalorder %s298_s29, %s294_s28 }
 0x1b3   :  { %p301_p8 = por %p300_p7, %p299_p6 }
 0x1b5   :  { %p302_p9 = pnand %p301_p8, %p295_p5 }
 0x227   :  { %v177_v57 = vpop.xlane.xlu1 %176  ;;  %v165_v58 = vpop.xlane.xlu0 %164 }
 0x228   :  { %v179_v61 = vcvt.f32.s32 %v177_v57  ;;  %v167_v62 = vcvt.f32.s32 %v165_v58 }
 0x22a   :  { %v180_v5 = vshll.u32 %v179_v61, 16  ;;  %v168_v6 = vshll.u32 %v167_v62, 16 }
 0x22b   :  { %v189_v59 = vpop.xlane.xlu1 %188  ;;  %v201_v60 = vpop.xlane.xlu0 %200 }
 0x22c   :  { %v191_v63 = vcvt.f32.s32 %v189_v59  ;;  %v203_v0 = vcvt.f32.s32 %v201_v60 }
 0x22e   :  { %v192_v7 = vshll.u32 %v191_v63, 16  ;;  %v204_v8 = vshll.u32 %v203_v0, 16 }
 0x22f   :  { %v175_v1 = vpop.xlane.xlu0 %174  ;;  %v163_v2 = vpop.xlane.xlu1 %162 }
 0x230   :  { %v178_v3 = vcvt.f32.s32 %v175_v1  ;;  %v166_v4 = vcvt.f32.s32 %v163_v2 }
 0x232   :  { %v181_v11 = vadd.s32 %v180_v5, %v178_v3  ;;  %v169_v12 = vadd.s32 %v168_v6, %v166_v4 }
 0x233   :  { %v199_v9 = vpop.xlane.xlu0 %198  ;;  %v187_v10 = vpop.xlane.xlu1 %186 }
 0x234   :  { %v202_v13 = vcvt.f32.s32 %v199_v9  ;;  %v190_v14 = vcvt.f32.s32 %v187_v10  ;;  %v206_v17 = vadd.s32 %v181_v11, %v169_v12 }
 0x236   :  { %v205_v15 = vadd.s32 %v204_v8, %v202_v13  ;;  %v193_v16 = vadd.s32 %v192_v7, %v190_v14 }
 0x238   :  { %v207_v18 = vadd.s32 %v205_v15, %v193_v16 }
 0x23a   :  { %v208_v19 = vadd.s32 %v207_v18, %v206_v17 }
 0x23c   :  { %v209_v20 = vrot.slane %v208_v19, 4 }
 0x23e   :  { %v210_v21 = vadd.s32 %v209_v20, %v208_v19 }
 0x240   :  { %v211_v22 = vrot.slane %v210_v21, 2 }
 0x242   :  { %v212_v23 = vadd.s32 %v211_v22, %v210_v21 }
 0x244   :  { %v213_v24 = vrot.slane %v212_v23, 1 }
 0x246   :  { %v214_v25 = vadd.s32 %v213_v24, %v212_v23 }
 0x248   :  { %216 = vst.msk [vmem:[#allocation4] sm:$0x1] %vm215_vm10, %v214_v25 }
 0x249   :  { %305 = shalt.err (!%p302_p9)
}
 0x24a   :  { %238 = dma.vmem_to_hbm [thread:$0]  %s236_s5, 16, %s412_s6, [#allocation5]  }
 0x24b   :  { %314 = dma.done.wait [#allocation3], 128  }
 0x24c   :  { %315 = vsyncadd [#allocation3], 4294967168 }
 0x24d   :  { %316 = dma.done.wait [#allocation5], 16  }
 0x24e   :  { %317 = vsyncadd [#allocation5], 4294967280 }
 0x24f   :  { %247 = vsyncpa [#allocation3], 1 }
 0x250   :  { %248 = vsyncpa [#allocation5], 1 }

</bundles_post_ra>
